<compile_context>
chip_gen: v5e
topology: v5e:2x2
jax: 0.10.0
libtpu: 0.0.40
codegen_flags: <defaults>
</compile_context>

<pallas_src>
import functools

import numpy as np

import jax
import jax.numpy as jnp
from jax.experimental import pallas as pl
from jax.experimental.pallas import tpu as pltpu


# Tap ordering: t = (dh + 1) * 3 + (dw + 1) == kh * 3 + kw; center tap is t==4.
_TAPS = tuple((dh, dw) for dh in (-1, 0, 1) for dw in (-1, 0, 1))
_CENTER = 4
_OFF_TAPS = tuple((t, dh, dw) for t, (dh, dw) in enumerate(_TAPS)
                  if t != _CENTER)


def _build_masks(H, W, HWpad):
    """(8, HWpad) f32 boundary masks (row r = _OFF_TAPS[r]), built on host.

    Per-image flat coordinates (zero-padding semantics); lane-padding columns
    (p >= H*W) are masked so circular rolls never leak garbage into valid
    output positions.
    """
    p = np.arange(HWpad)
    h = p // W
    w = p % W
    in_img = p < H * W
    rows = []
    for _, dh, dw in _OFF_TAPS:
        m = in_img.copy()
        if dh < 0:
            m &= h >= -dh
        elif dh > 0:
            m &= h < H - dh
        if dw < 0:
            m &= w >= -dw
        elif dw > 0:
            m &= w < W - dw
        rows.append(m)
    return jnp.asarray(np.stack(rows).astype(np.float32))


def _pick_images_per_block(n, cin, cout, hw_pad, *, budget_bytes=2 << 20):
    """Largest NB dividing N s.t. blocks stay small and >=2 grid steps remain."""
    best = 1
    for nb in range(1, n + 1):
        if n % nb:
            continue
        if n >= 2 and n // nb < 2:
            continue                    # keep >=2 parallel steps (v7x dual TC)
        if nb * (cin + cout) * hw_pad * 4 > budget_bytes:
            continue
        best = nb
    return best


def _sand_part1_kernel(x_ref, masks_ref, dww_ref, dwb_ref, pww_ref, pwb_ref,
                       out_ref, *, W, n_img, cin, cout, use_vpu_pw):
    """One block of n_img batch images per grid step (packed on sublanes).

    x_ref     : (n_img*Cin, HWpad)  storage dtype (bf16 by default)
    masks_ref : (8, HWpad)          f32 boundary masks, row r = _OFF_TAPS[r]
    dww_ref   : (n_img*Cin, 9)      f32 depthwise weights, col t = kh*3 + kw
    dwb_ref   : (n_img*Cin, 1)      f32 depthwise bias
    pww_ref   : (Cout, Cin)         pointwise weights (f32 on VPU path,
                                    storage dtype on the MXU path)
    pwb_ref   : (Cout, 1)           f32 pointwise bias
    out_ref   : (n_img*Cout, HWpad)
    """
    S = x_ref.shape[-1]

    # Tap math in f32 (v5e has no bf16 VPU); bf16 is for HBM/DMA + MXU only.
    x = x_ref[...].astype(jnp.float32)
    masks = masks_ref[...]
    dww = dww_ref[...]

    # Depthwise 3x3 (stride 1, zero pad 1).  Center tap seeds the accumulator
    # and absorbs the bias; the other 8 taps are static circular rolls along
    # the flat-spatial lane axis, zeroed at image borders by the masks.
    acc = x * dww[:, _CENTER:_CENTER + 1] + dwb_ref[...]
    for r, (t, dh, dw) in enumerate(_OFF_TAPS):
        off = dh * W + dw                                # static python int
        rolled = pltpu.roll(x, (-off) % S, axis=1)       # XLU lane rotation
        acc = acc + (rolled * masks[r:r + 1, :]) * dww[:, t:t + 1]

    acc = jnp.maximum(acc, 0.0)                          # ReLU

    # Pointwise 1x1 per image (images are stacked along sublanes).
    pww = pww_ref[...]
    pwb = pwb_ref[...]
    pww_f = pww.astype(jnp.float32) if use_vpu_pw else None
    ys = []
    for i in range(n_img):
        a_i = acc[i * cin:(i + 1) * cin, :]              # (Cin, HWpad) f32
        if use_vpu_pw:
            # Tiny Cout x Cin: a handful of VPU FMAs beats an MXU call.
            y = pww_f[:, 0:1] * a_i[0:1, :]
            for c in range(1, cin):
                y = y + pww_f[:, c:c + 1] * a_i[c:c + 1, :]
            y = y + pwb
        else:
            y = jnp.dot(pww, a_i.astype(pww.dtype),
                        preferred_element_type=jnp.float32) + pwb
        ys.append(y)
    y_full = ys[0] if n_img == 1 else jnp.concatenate(ys, axis=0)
    out_ref[...] = y_full.astype(out_ref.dtype)


def sand_part1(x_nchw, params, in_channels, out_channels, *,
               compute_dtype=jnp.bfloat16, pointwise_on_vpu=None,
               images_per_block=None):
    """Forward pass of SandPart1.  x_nchw: (N, Cin, H, W)."""
    if in_channels == out_channels:
        return x_nchw                                    # unuse_part1: Identity

    N, Cin, H, W = x_nchw.shape
    assert Cin == in_channels
    Cout = out_channels
    HW = H * W
    HWpad = ((HW + 127) // 128) * 128                    # lane-dense stores

    if pointwise_on_vpu is None:
        pointwise_on_vpu = (Cin * Cout) <= 256

    NB = images_per_block or _pick_images_per_block(N, Cin, Cout, HWpad)
    assert N % NB == 0
    n_blocks = N // NB

    # Weights are stored pre-laid-out in params: dw (Cin, 9), pw (Cout, Cin).
    dw_w = params["dw_w"].astype(jnp.float32)            # (Cin, 9)
    dw_b = params["dw_b"].astype(jnp.float32)            # (Cin,)
    pw_w = params["pw_w"]                                # (Cout, Cin)
    pw_b = params["pw_b"].astype(jnp.float32)            # (Cout,)

    # Free (contiguous) layout: flatten spatial, pad lanes to 128-multiple,
    # pack NB images on the sublane axis -> (n_blocks, NB*Cin, HWpad).
    x_flat = x_nchw.astype(compute_dtype).reshape(N, Cin, HW)
    if HWpad != HW:
        x_flat = jnp.pad(x_flat, ((0, 0), (0, 0), (0, HWpad - HW)))
    x_blocks = x_flat.reshape(n_blocks, NB * Cin, HWpad)

    masks = _build_masks(H, W, HWpad)                    # (8, HWpad) f32
    dww = jnp.tile(dw_w, (NB, 1))                        # (NB*Cin, 9)
    dwb = jnp.tile(dw_b.reshape(Cin, 1), (NB, 1))        # (NB*Cin, 1)
    pww = pw_w.astype(jnp.float32 if pointwise_on_vpu else compute_dtype)
    pwb = pw_b.reshape(Cout, 1)

    out_dtype = x_nchw.dtype
    in_bytes = NB * Cin * HWpad * jnp.dtype(compute_dtype).itemsize
    out_bytes = NB * Cout * HWpad * jnp.dtype(out_dtype).itemsize
    f32_work = (3 * NB * Cin + 2 * NB * Cout) * HWpad * 4
    vmem_limit = int(min(48 << 20,
                         max(16 << 20,
                             2 * (in_bytes + out_bytes) + f32_work + (4 << 20))))

    kernel = functools.partial(_sand_part1_kernel, W=W, n_img=NB, cin=Cin,
                               cout=Cout, use_vpu_pw=pointwise_on_vpu)

    out = pl.pallas_call(
        kernel,
        out_shape=jax.ShapeDtypeStruct((n_blocks, NB * Cout, HWpad), out_dtype),
        grid_spec=pltpu.PrefetchScalarGridSpec(
            num_scalar_prefetch=0,
            grid=(n_blocks,),
            in_specs=[
                pl.BlockSpec((pl.Squeezed(), NB * Cin, HWpad),
                             lambda b: (b, 0, 0)),
                pl.BlockSpec((8, HWpad), lambda b: (0, 0)),
                pl.BlockSpec((NB * Cin, 9), lambda b: (0, 0)),
                pl.BlockSpec((NB * Cin, 1), lambda b: (0, 0)),
                pl.BlockSpec((Cout, Cin), lambda b: (0, 0)),
                pl.BlockSpec((Cout, 1), lambda b: (0, 0)),
            ],
            out_specs=pl.BlockSpec((pl.Squeezed(), NB * Cout, HWpad),
                                   lambda b: (b, 0, 0)),
        ),
        compiler_params=pltpu.CompilerParams(
            dimension_semantics=("parallel",),
            vmem_limit_bytes=vmem_limit),
    )(x_blocks, masks, dww, dwb, pww, pwb)

    out = out.reshape(N, Cout, HWpad)
    if HWpad != HW:
        out = out[:, :, :HW]
    return out.reshape(N, Cout, H, W)


def make_params(key, in_channels, out_channels):
    """Deploy-time fused weights, stored pre-laid-out for the kernel.

    Mapping from PyTorch deploy weights:
      dwconv weight (Cin, 1, 3, 3)   -> dw_w = w.reshape(Cin, 9)  (col = kh*3+kw)
      pwconv weight (Cout, Cin, 1, 1)-> pw_w = w.reshape(Cout, Cin)
    """
    k1, k2, k3, k4 = jax.random.split(key, 4)
    return {
        "dw_w": 0.1 * jax.random.normal(k1, (in_channels, 9), jnp.float32),
        "dw_b": 0.1 * jax.random.normal(k2, (in_channels,), jnp.float32),
        "pw_w": 0.1 * jax.random.normal(k3, (out_channels, in_channels),
                                        jnp.float32),
        "pw_b": 0.1 * jax.random.normal(k4, (out_channels,), jnp.float32),
    }


def _reference(x_nchw, params):
    """Pure-JAX reference using lax.conv for correctness checks."""
    dw_w, dw_b = params["dw_w"], params["dw_b"]
    pw_w, pw_b = params["pw_w"], params["pw_b"]
    cin = dw_w.shape[0]
    cout = pw_w.shape[0]
    x = jnp.transpose(x_nchw, (0, 2, 3, 1))                      # NHWC
    dw_rhs = jnp.transpose(dw_w.reshape(cin, 3, 3),
                           (1, 2, 0)).reshape(3, 3, 1, cin)      # HWIO depthwise
    y = jax.lax.conv_general_dilated(
        x, dw_rhs, window_strides=(1, 1), padding=((1, 1), (1, 1)),
        dimension_numbers=("NHWC", "HWIO", "NHWC"),
        feature_group_count=cin) + dw_b
    y = jnp.maximum(y, 0.0)
    pw_rhs = jnp.transpose(pw_w, (1, 0)).reshape(1, 1, cin, cout)
    z = jax.lax.conv_general_dilated(
        y, pw_rhs, window_strides=(1, 1), padding="VALID",
        dimension_numbers=("NHWC", "HWIO", "NHWC")) + pw_b
    return jnp.transpose(z, (0, 3, 1, 2))


if __name__ == "__main__":
    key = jax.random.PRNGKey(0)
    kx, kp, kx2, kp2 = jax.random.split(key, 4)

    # --- primary shape: N=2, Cin=4, Cout=8, 16x16 (VPU pointwise path) ------
    N, Cin, H, W = 2, 4, 16, 16
    Cout = 8
    x = jax.random.normal(kx, (N, Cin, H, W), jnp.float32)
    params = make_params(kp, Cin, Cout)

    fwd = jax.jit(functools.partial(sand_part1, in_channels=Cin,
                                    out_channels=Cout))          # bf16 default
    out = jax.block_until_ready(fwd(x, params))
    assert out.shape == (N, Cout, H, W), out.shape
    x_r = x.astype(jnp.bfloat16).astype(jnp.float32)             # kernel rounds x
    ref = _reference(x_r, params)
    assert jnp.allclose(out, ref, atol=2e-3, rtol=2e-3), "bf16-path mismatch"

    # Pure-f32 path, tight tolerance.
    out32 = jax.block_until_ready(
        sand_part1(x, params, Cin, Cout, compute_dtype=jnp.float32))
    assert jnp.allclose(out32, _reference(x, params), atol=1e-4, rtol=1e-4), \
        "f32-path mismatch"

    # --- second shape: exercises batch packing (NB=2), lane padding
    #     (14*14=196 -> 256) and the MXU pointwise path ----------------------
    N2, C2i, C2o, H2, W2 = 4, 16, 32, 14, 14
    x2 = jax.random.normal(kx2, (N2, C2i, H2, W2), jnp.float32)
    params2 = make_params(kp2, C2i, C2o)
    out2 = jax.block_until_ready(sand_part1(x2, params2, C2i, C2o))
    assert out2.shape == (N2, C2o, H2, W2), out2.shape
    x2_r = x2.astype(jnp.bfloat16).astype(jnp.float32)
    p2_r = dict(params2)
    p2_r["pw_w"] = params2["pw_w"].astype(jnp.bfloat16).astype(jnp.float32)
    ref2 = _reference(x2_r, p2_r)
    assert jnp.allclose(out2, ref2, atol=2e-2, rtol=2e-2), "MXU-path mismatch"

    # --- identity branch (in_channels == out_channels) ----------------------
    out_id = jax.block_until_ready(sand_part1(x, params, Cin, Cin))
    assert jnp.array_equal(out_id, x)

    print("KERNEL_OK")
</pallas_src>

<mosaic_0001>
module attributes {stable_mosaic.version = 11 : i64} {
  func.func @_sand_part1_kernel(%arg0: i32, %arg1: memref<1x4x256xbf16, #tpu.memory_space<vmem>>, %arg2: memref<8x256xf32, #tpu.memory_space<vmem>>, %arg3: memref<4x9xf32, #tpu.memory_space<vmem>>, %arg4: memref<4x1xf32, #tpu.memory_space<vmem>>, %arg5: memref<8x4xf32, #tpu.memory_space<vmem>>, %arg6: memref<8x1xf32, #tpu.memory_space<vmem>>, %arg7: memref<1x8x256xf32, #tpu.memory_space<vmem>>) attributes {dimension_semantics = [#tpu.dimension_semantics<parallel>], iteration_bounds = array<i64: 2>, scalar_prefetch = 0 : i64, scratch_operands = 0 : i64, tpu.core_type = #tpu.core_type<tc>, window_params = [{transform_indices = @transform_0, window_bounds = array<i64: 1, 4, 256>}, {pipeline_mode = #tpu.pipeline_mode<synchronous>, transform_indices = @transform_1, window_bounds = array<i64: 8, 256>}, {pipeline_mode = #tpu.pipeline_mode<synchronous>, transform_indices = @transform_2, window_bounds = array<i64: 4, 9>}, {pipeline_mode = #tpu.pipeline_mode<synchronous>, transform_indices = @transform_3, window_bounds = array<i64: 4, 1>}, {pipeline_mode = #tpu.pipeline_mode<synchronous>, transform_indices = @transform_4, window_bounds = array<i64: 8, 4>}, {pipeline_mode = #tpu.pipeline_mode<synchronous>, transform_indices = @transform_5, window_bounds = array<i64: 8, 1>}, {transform_indices = @transform_6, window_bounds = array<i64: 1, 8, 256>}]} {
    %c0 = arith.constant 0 : index
    %c0_0 = arith.constant 0 : index
    %c0_1 = arith.constant 0 : index
    %0 = vector.load %arg1[%c0, %c0_0, %c0_1] : memref<1x4x256xbf16, #tpu.memory_space<vmem>>, vector<1x4x256xbf16>
    %1 = vector.shape_cast %0 : vector<1x4x256xbf16> to vector<4x256xbf16>
    %2 = arith.extf %1 : vector<4x256xbf16> to vector<4x256xf32>
    %c0_2 = arith.constant 0 : index
    %c0_3 = arith.constant 0 : index
    %3 = vector.load %arg2[%c0_2, %c0_3] : memref<8x256xf32, #tpu.memory_space<vmem>>, vector<8x256xf32>
    %c0_4 = arith.constant 0 : index
    %c0_5 = arith.constant 0 : index
    %4 = vector.load %arg3[%c0_4, %c0_5] : memref<4x9xf32, #tpu.memory_space<vmem>>, vector<4x9xf32>
    %5 = vector.extract_strided_slice %4 {offsets = [0, 4], sizes = [4, 1], strides = [1, 1]} : vector<4x9xf32> to vector<4x1xf32>
    %6 = vector.broadcast %5 : vector<4x1xf32> to vector<4x256xf32>
    %7 = arith.mulf %2, %6 : vector<4x256xf32>
    %c0_6 = arith.constant 0 : index
    %c0_7 = arith.constant 0 : index
    %8 = vector.load %arg4[%c0_6, %c0_7] : memref<4x1xf32, #tpu.memory_space<vmem>>, vector<4x1xf32>
    %9 = vector.broadcast %8 : vector<4x1xf32> to vector<4x256xf32>
    %10 = arith.addf %7, %9 : vector<4x256xf32>
    %c17_i32 = arith.constant 17 : i32
    %11 = tpu.dynamic_rotate %2 by %c17_i32 dim 1 : vector<4x256xf32>, i32 -> vector<4x256xf32>
    %12 = vector.extract_strided_slice %3 {offsets = [0, 0], sizes = [1, 256], strides = [1, 1]} : vector<8x256xf32> to vector<1x256xf32>
    %13 = vector.broadcast %12 : vector<1x256xf32> to vector<4x256xf32>
    %14 = arith.mulf %11, %13 : vector<4x256xf32>
    %15 = vector.extract_strided_slice %4 {offsets = [0, 0], sizes = [4, 1], strides = [1, 1]} : vector<4x9xf32> to vector<4x1xf32>
    %16 = vector.broadcast %15 : vector<4x1xf32> to vector<4x256xf32>
    %17 = arith.mulf %14, %16 : vector<4x256xf32>
    %18 = arith.addf %10, %17 : vector<4x256xf32>
    %c16_i32 = arith.constant 16 : i32
    %19 = tpu.dynamic_rotate %2 by %c16_i32 dim 1 : vector<4x256xf32>, i32 -> vector<4x256xf32>
    %20 = vector.extract_strided_slice %3 {offsets = [1, 0], sizes = [1, 256], strides = [1, 1]} : vector<8x256xf32> to vector<1x256xf32>
    %21 = vector.broadcast %20 : vector<1x256xf32> to vector<4x256xf32>
    %22 = arith.mulf %19, %21 : vector<4x256xf32>
    %23 = vector.extract_strided_slice %4 {offsets = [0, 1], sizes = [4, 1], strides = [1, 1]} : vector<4x9xf32> to vector<4x1xf32>
    %24 = vector.broadcast %23 : vector<4x1xf32> to vector<4x256xf32>
    %25 = arith.mulf %22, %24 : vector<4x256xf32>
    %26 = arith.addf %18, %25 : vector<4x256xf32>
    %c15_i32 = arith.constant 15 : i32
    %27 = tpu.dynamic_rotate %2 by %c15_i32 dim 1 : vector<4x256xf32>, i32 -> vector<4x256xf32>
    %28 = vector.extract_strided_slice %3 {offsets = [2, 0], sizes = [1, 256], strides = [1, 1]} : vector<8x256xf32> to vector<1x256xf32>
    %29 = vector.broadcast %28 : vector<1x256xf32> to vector<4x256xf32>
    %30 = arith.mulf %27, %29 : vector<4x256xf32>
    %31 = vector.extract_strided_slice %4 {offsets = [0, 2], sizes = [4, 1], strides = [1, 1]} : vector<4x9xf32> to vector<4x1xf32>
    %32 = vector.broadcast %31 : vector<4x1xf32> to vector<4x256xf32>
    %33 = arith.mulf %30, %32 : vector<4x256xf32>
    %34 = arith.addf %26, %33 : vector<4x256xf32>
    %c1_i32 = arith.constant 1 : i32
    %35 = tpu.dynamic_rotate %2 by %c1_i32 dim 1 : vector<4x256xf32>, i32 -> vector<4x256xf32>
    %36 = vector.extract_strided_slice %3 {offsets = [3, 0], sizes = [1, 256], strides = [1, 1]} : vector<8x256xf32> to vector<1x256xf32>
    %37 = vector.broadcast %36 : vector<1x256xf32> to vector<4x256xf32>
    %38 = arith.mulf %35, %37 : vector<4x256xf32>
    %39 = vector.extract_strided_slice %4 {offsets = [0, 3], sizes = [4, 1], strides = [1, 1]} : vector<4x9xf32> to vector<4x1xf32>
    %40 = vector.broadcast %39 : vector<4x1xf32> to vector<4x256xf32>
    %41 = arith.mulf %38, %40 : vector<4x256xf32>
    %42 = arith.addf %34, %41 : vector<4x256xf32>
    %c255_i32 = arith.constant 255 : i32
    %43 = tpu.dynamic_rotate %2 by %c255_i32 dim 1 : vector<4x256xf32>, i32 -> vector<4x256xf32>
    %44 = vector.extract_strided_slice %3 {offsets = [4, 0], sizes = [1, 256], strides = [1, 1]} : vector<8x256xf32> to vector<1x256xf32>
    %45 = vector.broadcast %44 : vector<1x256xf32> to vector<4x256xf32>
    %46 = arith.mulf %43, %45 : vector<4x256xf32>
    %47 = vector.extract_strided_slice %4 {offsets = [0, 5], sizes = [4, 1], strides = [1, 1]} : vector<4x9xf32> to vector<4x1xf32>
    %48 = vector.broadcast %47 : vector<4x1xf32> to vector<4x256xf32>
    %49 = arith.mulf %46, %48 : vector<4x256xf32>
    %50 = arith.addf %42, %49 : vector<4x256xf32>
    %c241_i32 = arith.constant 241 : i32
    %51 = tpu.dynamic_rotate %2 by %c241_i32 dim 1 : vector<4x256xf32>, i32 -> vector<4x256xf32>
    %52 = vector.extract_strided_slice %3 {offsets = [5, 0], sizes = [1, 256], strides = [1, 1]} : vector<8x256xf32> to vector<1x256xf32>
    %53 = vector.broadcast %52 : vector<1x256xf32> to vector<4x256xf32>
    %54 = arith.mulf %51, %53 : vector<4x256xf32>
    %55 = vector.extract_strided_slice %4 {offsets = [0, 6], sizes = [4, 1], strides = [1, 1]} : vector<4x9xf32> to vector<4x1xf32>
    %56 = vector.broadcast %55 : vector<4x1xf32> to vector<4x256xf32>
    %57 = arith.mulf %54, %56 : vector<4x256xf32>
    %58 = arith.addf %50, %57 : vector<4x256xf32>
    %c240_i32 = arith.constant 240 : i32
    %59 = tpu.dynamic_rotate %2 by %c240_i32 dim 1 : vector<4x256xf32>, i32 -> vector<4x256xf32>
    %60 = vector.extract_strided_slice %3 {offsets = [6, 0], sizes = [1, 256], strides = [1, 1]} : vector<8x256xf32> to vector<1x256xf32>
    %61 = vector.broadcast %60 : vector<1x256xf32> to vector<4x256xf32>
    %62 = arith.mulf %59, %61 : vector<4x256xf32>
    %63 = vector.extract_strided_slice %4 {offsets = [0, 7], sizes = [4, 1], strides = [1, 1]} : vector<4x9xf32> to vector<4x1xf32>
    %64 = vector.broadcast %63 : vector<4x1xf32> to vector<4x256xf32>
    %65 = arith.mulf %62, %64 : vector<4x256xf32>
    %66 = arith.addf %58, %65 : vector<4x256xf32>
    %c239_i32 = arith.constant 239 : i32
    %67 = tpu.dynamic_rotate %2 by %c239_i32 dim 1 : vector<4x256xf32>, i32 -> vector<4x256xf32>
    %68 = vector.extract_strided_slice %3 {offsets = [7, 0], sizes = [1, 256], strides = [1, 1]} : vector<8x256xf32> to vector<1x256xf32>
    %69 = vector.broadcast %68 : vector<1x256xf32> to vector<4x256xf32>
    %70 = arith.mulf %67, %69 : vector<4x256xf32>
    %71 = vector.extract_strided_slice %4 {offsets = [0, 8], sizes = [4, 1], strides = [1, 1]} : vector<4x9xf32> to vector<4x1xf32>
    %72 = vector.broadcast %71 : vector<4x1xf32> to vector<4x256xf32>
    %73 = arith.mulf %70, %72 : vector<4x256xf32>
    %74 = arith.addf %66, %73 : vector<4x256xf32>
    %cst = arith.constant 0.000000e+00 : f32
    %75 = vector.broadcast %cst : f32 to vector<4x256xf32>
    %76 = arith.maximumf %74, %75 : vector<4x256xf32>
    %c0_8 = arith.constant 0 : index
    %c0_9 = arith.constant 0 : index
    %77 = vector.load %arg5[%c0_8, %c0_9] : memref<8x4xf32, #tpu.memory_space<vmem>>, vector<8x4xf32>
    %c0_10 = arith.constant 0 : index
    %c0_11 = arith.constant 0 : index
    %78 = vector.load %arg6[%c0_10, %c0_11] : memref<8x1xf32, #tpu.memory_space<vmem>>, vector<8x1xf32>
    %79 = vector.extract_strided_slice %77 {offsets = [0, 0], sizes = [8, 1], strides = [1, 1]} : vector<8x4xf32> to vector<8x1xf32>
    %80 = vector.extract_strided_slice %76 {offsets = [0, 0], sizes = [1, 256], strides = [1, 1]} : vector<4x256xf32> to vector<1x256xf32>
    %81 = vector.broadcast %79 : vector<8x1xf32> to vector<8x256xf32>
    %82 = vector.broadcast %80 : vector<1x256xf32> to vector<8x256xf32>
    %83 = arith.mulf %81, %82 : vector<8x256xf32>
    %84 = vector.extract_strided_slice %77 {offsets = [0, 1], sizes = [8, 1], strides = [1, 1]} : vector<8x4xf32> to vector<8x1xf32>
    %85 = vector.extract_strided_slice %76 {offsets = [1, 0], sizes = [1, 256], strides = [1, 1]} : vector<4x256xf32> to vector<1x256xf32>
    %86 = vector.broadcast %84 : vector<8x1xf32> to vector<8x256xf32>
    %87 = vector.broadcast %85 : vector<1x256xf32> to vector<8x256xf32>
    %88 = arith.mulf %86, %87 : vector<8x256xf32>
    %89 = arith.addf %83, %88 : vector<8x256xf32>
    %90 = vector.extract_strided_slice %77 {offsets = [0, 2], sizes = [8, 1], strides = [1, 1]} : vector<8x4xf32> to vector<8x1xf32>
    %91 = vector.extract_strided_slice %76 {offsets = [2, 0], sizes = [1, 256], strides = [1, 1]} : vector<4x256xf32> to vector<1x256xf32>
    %92 = vector.broadcast %90 : vector<8x1xf32> to vector<8x256xf32>
    %93 = vector.broadcast %91 : vector<1x256xf32> to vector<8x256xf32>
    %94 = arith.mulf %92, %93 : vector<8x256xf32>
    %95 = arith.addf %89, %94 : vector<8x256xf32>
    %96 = vector.extract_strided_slice %77 {offsets = [0, 3], sizes = [8, 1], strides = [1, 1]} : vector<8x4xf32> to vector<8x1xf32>
    %97 = vector.extract_strided_slice %76 {offsets = [3, 0], sizes = [1, 256], strides = [1, 1]} : vector<4x256xf32> to vector<1x256xf32>
    %98 = vector.broadcast %96 : vector<8x1xf32> to vector<8x256xf32>
    %99 = vector.broadcast %97 : vector<1x256xf32> to vector<8x256xf32>
    %100 = arith.mulf %98, %99 : vector<8x256xf32>
    %101 = arith.addf %95, %100 : vector<8x256xf32>
    %102 = vector.broadcast %78 : vector<8x1xf32> to vector<8x256xf32>
    %103 = arith.addf %101, %102 : vector<8x256xf32>
    %c0_12 = arith.constant 0 : index
    %c0_13 = arith.constant 0 : index
    %c0_14 = arith.constant 0 : index
    %104 = vector.load %arg7[%c0_12, %c0_13, %c0_14] : memref<1x8x256xf32, #tpu.memory_space<vmem>>, vector<1x8x256xf32>
    %105 = vector.shape_cast %104 : vector<1x8x256xf32> to vector<8x256xf32>
    %106 = vector.shape_cast %103 : vector<8x256xf32> to vector<1x8x256xf32>
    tpu.vector_store %arg7[%c0_12, %c0_13, %c0_14], %106 {strides = array<i32>} : memref<1x8x256xf32, #tpu.memory_space<vmem>>, vector<1x8x256xf32>,
    return
  }
  func.func @transform_0(%arg0: i32) -> (i32, i32, i32) {
    %c0_i32 = arith.constant 0 : i32
    %c0_i32_0 = arith.constant 0 : i32
    %c0_i32_1 = arith.constant 0 : i32
    return %arg0, %c0_i32, %c0_i32_0 : i32, i32, i32
  }
  func.func @transform_1(%arg0: i32) -> (i32, i32) {
    %c0_i32 = arith.constant 0 : i32
    %c0_i32_0 = arith.constant 0 : i32
    %c0_i32_1 = arith.constant 0 : i32
    return %c0_i32, %c0_i32_0 : i32, i32
  }
  func.func @transform_2(%arg0: i32) -> (i32, i32) {
    %c0_i32 = arith.constant 0 : i32
    %c0_i32_0 = arith.constant 0 : i32
    %c0_i32_1 = arith.constant 0 : i32
    return %c0_i32, %c0_i32_0 : i32, i32
  }
  func.func @transform_3(%arg0: i32) -> (i32, i32) {
    %c0_i32 = arith.constant 0 : i32
    %c0_i32_0 = arith.constant 0 : i32
    %c0_i32_1 = arith.constant 0 : i32
    return %c0_i32, %c0_i32_0 : i32, i32
  }
  func.func @transform_4(%arg0: i32) -> (i32, i32) {
    %c0_i32 = arith.constant 0 : i32
    %c0_i32_0 = arith.constant 0 : i32
    %c0_i32_1 = arith.constant 0 : i32
    return %c0_i32, %c0_i32_0 : i32, i32
  }
  func.func @transform_5(%arg0: i32) -> (i32, i32) {
    %c0_i32 = arith.constant 0 : i32
    %c0_i32_0 = arith.constant 0 : i32
    %c0_i32_1 = arith.constant 0 : i32
    return %c0_i32, %c0_i32_0 : i32, i32
  }
  func.func @transform_6(%arg0: i32) -> (i32, i32, i32) {
    %c0_i32 = arith.constant 0 : i32
    %c0_i32_0 = arith.constant 0 : i32
    %c0_i32_1 = arith.constant 0 : i32
    return %arg0, %c0_i32, %c0_i32_0 : i32, i32, i32
  }
}

</mosaic_0001>

<bundles_post_ra>
// kernel: sand_part1.1
= control target key start
LH: loop header
LB: loop body
LE: loop exit
PB: predicated region body
PF: predicated region fallthrough
CT: control target
= control target key end

     0   :  { %s744_s21 = smov 0   ;;  %s907_s0 = inlined_call_operand.vmem [shape: bf16[2,4,256], index: 0, kind: input, shape index: {}]   ;;  %s908_s1 = inlined_call_operand.vmem [shape: f32[8,256], index: 1, kind: input, shape index: {}]   ;;  %s909_s2 = inlined_call_operand.vmem [shape: f32[4,9], index: 2, kind: input, shape index: {}]   ;;  %s910_s3 = inlined_call_operand.vmem [shape: f32[4,1], index: 3, kind: input, shape index: {}]   ;;  %s911_s4 = inlined_call_operand.vmem [shape: f32[8,4], index: 4, kind: input, shape index: {}]   ;;  %s912_s5 = inlined_call_operand.vmem [shape: f32[8,1], index: 5, kind: input, shape index: {}]   ;;  %s913_s6 = inlined_call_operand.vmem [shape: f32[2,8,256], index: 6, kind: output, shape index: {}]  }
   0x1 LB: > { %s629_s22 = sadd.s32 4294967295, %s689_s21   ;;  %p633_p0 = scmp.ge.s32.totalorder %s689_s21, 1  ;;  %s689_s21 = sphi %s744_s21, %s16_s21  }
   0x2   : > { %p212_p1 = scmp.lt.s32.totalorder %s689_s21, 3 }
   0x4   : > { %p213_p2 = pnand %p633_p0, %p212_p1 }
   0x5   : > { %p242_p3 = scmp.lt.s32.totalorder (!%p213_p2), %s629_s22, 1  ;;  %s695_s7 = smov (!%p213_p2), 17  }
   0x6   : > { %216 = sbr.rel (%p213_p2) target bundleno = 231 (0xe7), region = 44  ;;  %s697_s8 = smov (!%p213_p2), 16  }
   0x7   : > { %s698_s9 = smov (!%p213_p2), 15   ;;  %s700_s10 = smov (!%p213_p2), 1  }
   0x8   : > { %s703_s11 = smov (!%p213_p2), 127   ;;  %s704_s12 = smov (!%p213_p2), 113  }
   0x9   : > { %s706_s13 = smov (!%p213_p2), 112   ;;  %s707_s14 = smov (!%p213_p2), 111  }
   0xb   : > { %v755_v0 = vld [vmem:[%s909_s2] sm:$0xf]  ;;  %v691_v1 = vmov 4   ;;  %v692_v2 = vmov 0   ;;  %s915_s22 = smov (!%p242_p3, %s629_s22), 1  ;;  %v693_v3 = vmov 6   ;;  %v288_v42 = vlaneseq }
   0xc   : > { %668 = vset.pattern.permute.xlu0 %v691_v1  ;;  %670 = vset.pattern.permute.xlu2 %v692_v2  ;;  %s640_s25 = sshll.u32 %s915_s22, 2  ;;  %v267_v6 = vld [vmem:[%s910_s3] sm:$0xf]  ;;  %v694_v7 = vmov 1   ;;  %v696_v10 = vmov 2   ;;  %v699_v15 = vmov 3  }
   0xd   : > { %259 = vperm.xlu0 %668, %v755_v0   ;;  %675 = vset.pattern.permute.xlu1 %v693_v3  ;;  %s246_s28 = scalar_lea.vmem %s907_s0, %s640_s25  ;;  %v701_v18 = vmov 7   ;;  %v702_v19 = vmov 5   ;;  %v705_v24 = vmov 8   ;;  %v507_v29 = vld [vmem:[%s911_s4] sm:$0xff]  ;;  %v807_v45 = vand.u32 127, %v288_v42  ;;  %v814_v47 = vld [vmem:[%s908_s1 + $0x8] sm:$0xff] }
   0xe   : > { %298 = vperm.xlu2 %670, %v755_v0   ;;  %v252_v4 = vld [vmem:[%s246_s28] sm:$0xf]  ;;  %v708_v50 = vmov 839922192   ;;  %v294_v52 = vperm.slane %v814_v47, 0  ;;  %v323_v60 = vperm.slane %v814_v47, 1 }
   0xf   : > { %v766_v5 = vunpack.c.l.bf16 %v252_v4  ;;  %v508_v30 = vld [vmem:[%s912_s5] sm:$0xff]  ;;  %vm290_vm0 = vcmp.lt.s32.totalorder %v807_v45, 17  ;;  %v262_v51 = vunpack.c.l.s4 %v708_v50  ;;  %vm319_vm1 = vcmp.lt.s32.totalorder %v807_v45, 16  ;;  %s641_s25 = sshll.u32 %s915_s22, 4 }
  0x10   : > { %v823_v54 = vld [vmem:[%s908_s1] sm:$0xff]  ;;  %vm347_vm2 = vcmp.lt.s32.totalorder %v807_v45, 15  ;;  %vm375_vm3 = vcmp.lt.s32.totalorder %v807_v45, 1  ;;  %vm306_vm4 = vcmask 1043456   ;;  %vm403_vm5 = vcmp.lt.s32.totalorder %v807_v45, 127  ;;  %s251_s28 = scalar_lea.vmem %s913_s6, %s641_s25 }
  0x11   : > { %279 = vst [vmem:[#allocation1] ss:$2 sm:$0xff] %v766_v5  ;;  %v263_v55 = vunpack.c.0.s8 %v262_v51  ;;  %v293_v57 = vperm.slane %v823_v54, 0  ;;  %vm459_vm6 = vcmp.lt.s32.totalorder %v807_v45, 112  ;;  %vm431_vm7 = vcmp.lt.s32.totalorder %v807_v45, 113 }
  0x12   : > { %v434_v50 = vperm.slane %v823_v54, 5  ;;  %vm487_vm8 = vcmp.lt.s32.totalorder %v807_v45, 111  ;;  %v491_v51 = vperm.slane %v814_v47, 7 }
  0x15   : > { %669 = vset.pattern.permute.xlu0 %v692_v2 }
  0x16   : > { %270 = vperm.xlu0 %669, %v267_v6   ;;  %671 = vset.pattern.permute.xlu2 %v694_v7 }
  0x17   : > { %327 = vperm.xlu2 %671, %v755_v0  }
  0x18   : > { %v280_v8 = vld.sshfl [vmem:[#allocation1] sm:$0xff pattern:$0x75316420]  ;;  %v281_v9 = vld.sshfl [vmem:[#allocation1 + $0x8] sm:$0xff pattern:$0x75316420] }
  0x19   : > { %284 = vrot.lane.b32.xlu1 %v280_v8, %s695_s7  ;;  %310 = vst [vmem:[#allocation1] ss:$2 sm:$0xff] %v766_v5 }
  0x1f   : > { %672 = vset.pattern.permute.xlu2 %v696_v10 }
  0x20   : > { %355 = vperm.xlu2 %672, %v755_v0   ;;  %v311_v11 = vld.sshfl [vmem:[#allocation1] sm:$0xff pattern:$0x75316420]  ;;  %v312_v12 = vld.sshfl [vmem:[#allocation1 + $0x8] sm:$0xff pattern:$0x75316420] }
  0x21   : > { %286 = vrot.lane.b32.xlu1 %v281_v9, %s695_s7  ;;  %338 = vst [vmem:[#allocation1] ss:$2 sm:$0xff] %v766_v5  ;;  %v322_v9 = vperm.slane %v823_v54, 1 }
  0x28   : > { %315 = vrot.lane.b32.xlu2 %v311_v11, %s697_s8  ;;  %v339_v13 = vld.sshfl [vmem:[#allocation1] sm:$0xff pattern:$0x75316420]  ;;  %v340_v14 = vld.sshfl [vmem:[#allocation1 + $0x8] sm:$0xff pattern:$0x75316420] }
  0x29   : > { %439 = vperm.xlu1 %675, %v755_v0   ;;  %343 = vrot.lane.b32.xlu0 %v339_v13, %s698_s9  ;;  %366 = vst [vmem:[#allocation1] ss:$2 sm:$0xff] %v766_v5 }
  0x2a   : > { %673 = vset.pattern.permute.xlu2 %v699_v15 }
  0x30   : > { %383 = vperm.xlu2 %673, %v755_v0   ;;  %v367_v16 = vld.sshfl [vmem:[#allocation1] sm:$0xff pattern:$0x75316420]  ;;  %v368_v17 = vld.sshfl [vmem:[#allocation1 + $0x8] sm:$0xff pattern:$0x75316420] }
  0x31   : > { %317 = vrot.lane.b32.xlu1 %v312_v12, %s697_s8  ;;  %371 = vrot.lane.b32.xlu0 %v367_v16, %s700_s10  ;;  %394 = vst [vmem:[#allocation1] ss:$2 sm:$0xff] %v766_v5  ;;  %v407_v16 = vperm.slane %v814_v47, 4 }
  0x32   : > { %676 = vset.pattern.permute.xlu1 %v701_v18 }
  0x38   : > { %674 = vset.pattern.permute.xlu2 %v702_v19  ;;  %v396_v20 = vld.sshfl [vmem:[#allocation1 + $0x8] sm:$0xff pattern:$0x75316420]  ;;  %v395_v21 = vld.sshfl [vmem:[#allocation1] sm:$0xff pattern:$0x75316420] }
  0x39   : > { %411 = vperm.xlu2 %674, %v755_v0   ;;  %345 = vrot.lane.b32.xlu1 %v340_v14, %s698_s9  ;;  %422 = vst [vmem:[#allocation1] ss:$2 sm:$0xff] %v766_v5 }
  0x3a   : > { %399 = vrot.lane.b32.xlu0 %v395_v21, %s703_s11 }
  0x40   : > { %v423_v22 = vld.sshfl [vmem:[#allocation1] sm:$0xff pattern:$0x75316420]  ;;  %v424_v23 = vld.sshfl [vmem:[#allocation1 + $0x8] sm:$0xff pattern:$0x75316420] }
  0x41   : > { %373 = vrot.lane.b32.xlu1 %v368_v17, %s700_s10  ;;  %450 = vst [vmem:[#allocation1] ss:$2 sm:$0xff] %v766_v5  ;;  %677 = vset.pattern.permute.xlu2 %v705_v24  ;;  %v350_v17 = vperm.slane %v823_v54, 2 }
  0x42   : > { %427 = vrot.lane.b32.xlu0 %v423_v22, %s704_s12 }
  0x48   : > { %v452_v25 = vld.sshfl [vmem:[#allocation1 + $0x8] sm:$0xff pattern:$0x75316420]  ;;  %v451_v26 = vld.sshfl [vmem:[#allocation1] sm:$0xff pattern:$0x75316420] }
  0x49   : > { %401 = vrot.lane.b32.xlu1 %v396_v20, %s703_s11  ;;  %478 = vst [vmem:[#allocation1] ss:$2 sm:$0xff] %v766_v5  ;;  %455 = vrot.lane.b32.xlu2 %v451_v26, %s706_s13 }
  0x4a   : > { %457 = vrot.lane.b32.xlu0 %v452_v25, %s706_s13 }
  0x50   : > { %v480_v27 = vld.sshfl [vmem:[#allocation1 + $0x8] sm:$0xff pattern:$0x75316420]  ;;  %v479_v28 = vld.sshfl [vmem:[#allocation1] sm:$0xff pattern:$0x75316420] }
  0x51   : > { %429 = vrot.lane.b32.xlu1 %v424_v23, %s704_s12  ;;  %483 = vrot.lane.b32.xlu2 %v479_v28, %s707_s14 }
  0x52   : > { %485 = vrot.lane.b32.xlu0 %v480_v27, %s707_s14  ;;  %v378_v27 = vperm.slane %v823_v54, 3 }
  0x59   : > { %467 = vperm.xlu1 %676, %v755_v0   ;;  %495 = vperm.xlu2 %677, %v755_v0  }
  0x5a   : > { %511 = vperm.xlu0 %669, %v507_v29  }
  0x61   : > { %678 = vset.pattern.permute.xlu1 %v694_v7  ;;  %679 = vset.pattern.permute.xlu2 %v696_v10  ;;  %v379_v10 = vperm.slane %v814_v47, 3 }
  0x62   : > { %680 = vset.pattern.permute.xlu0 %v699_v15  ;;  %524 = vperm.xlu1 %678, %v507_v29  }
  0x63   : > { %552 = vperm.xlu0 %680, %v507_v29   ;;  %538 = vperm.xlu2 %679, %v507_v29  }
  0x68   : > { %v299_v31 = vpop.permute.xlu2 %298 }
  0x6a   : > { %681 = vset.pattern.permute.xlu1 %v692_v2 }
  0x6b   : > { %682 = vset.pattern.permute.xlu0 %v692_v2  ;;  %567 = vperm.xlu1 %681, %v508_v30   ;;  %v351_v2 = vperm.slane %v814_v47, 2 }
  0x71   : > { %v799_v32 = vpop.permute.xlu2 %327 }
  0x7a   : > { %v801_v34 = vpop.permute.xlu2 %355 }
  0x7f   : > { %v260_v33 = vpop.permute.xlu0 %259 }
  0x80   : > { %v264_v63 = vperm.slane %v260_v33, %v263_v55 }
  0x82   : > { %v316_v38 = vpop.permute.xlu2 %315  ;;  %v266_v7 = vmul.f32 %v264_v63, %v766_v5 }
  0x88   : > { %v271_v36 = vpop.permute.xlu0 %270 }
  0x89   : > { %v275_v11 = vperm.slane %v271_v36, %v263_v55  ;;  %v406_v36 = vperm.slane %v823_v54, 4 }
  0x8a   : > { %v805_v41 = vpop.permute.xlu2 %383 }
  0x8b   : > { %v285_v35 = vpop.permute.xlu1 %284  ;;  %v277_v24 = vadd.f32 %v275_v11, %v266_v7 }
  0x93   : > { %v287_v37 = vpop.permute.xlu1 %286  ;;  %v809_v46 = vpop.permute.xlu2 %411 }
  0x94   : > { %v291_v53 = vsel %vm290_vm0, %v285_v35, %v287_v37  ;;  %v292_v59 = vsel %vm290_vm0, %v287_v37, %v285_v35 }
  0x95   : > { %v296_v56 = vmul.f32 %v294_v52, %v291_v53  ;;  %v295_v3 = vmul.f32 %v293_v57, %v292_v59 }
  0x97   : > { %v302_v0 = vmul.f32 %v299_v31, %v296_v56  ;;  %v301_v14 = vmul.f32 %v299_v31, %v295_v3  ;;  %v490_v56 = vperm.slane %v823_v54, 7 }
  0x99   : > { %v305_v8 = vrot.slane %v302_v0, 4 }
  0x9b   : > { %v803_v39 = vpop.permute.xlu1 %439  ;;  %v344_v40 = vpop.permute.xlu0 %343  ;;  %v307_v20 = vsel %vm306_vm4, %v301_v14, %v305_v8 }
  0x9c   : > { %v309_v31 = vadd.f32 %v307_v20, %v277_v24 }
  0xa3   : > { %v318_v43 = vpop.permute.xlu1 %317  ;;  %v372_v44 = vpop.permute.xlu0 %371 }
  0xa4   : > { %v827_v58 = vpop.permute.xlu2 %455  ;;  %v320_v1 = vsel %vm319_vm1, %v316_v38, %v318_v43  ;;  %v321_v15 = vsel %vm319_vm1, %v318_v43, %v316_v38  ;;  %v435_v38 = vperm.slane %v814_v47, 5 }
  0xa5   : > { %v325_v6 = vmul.f32 %v323_v60, %v320_v1  ;;  %v324_v25 = vmul.f32 %v322_v9, %v321_v15 }
  0xa7   : > { %v331_v5 = vmul.f32 %v799_v32, %v325_v6 }
  0xa9   : > { %v334_v33 = vrot.slane %v331_v5, 4 }
  0xab   : > { %v346_v48 = vpop.permute.xlu1 %345 }
  0xac   : > { %v817_v49 = vpop.permute.xlu0 %399  ;;  %v348_v4 = vsel %vm347_vm2, %v344_v40, %v346_v48  ;;  %v349_v21 = vsel %vm347_vm2, %v346_v48, %v344_v40  ;;  %v484_v28 = vpop.permute.xlu2 %483  ;;  %v330_v40 = vmul.f32 %v799_v32, %v324_v25  ;;  %v463_v32 = vperm.slane %v814_v47, 6 }
  0xad   : > { %v353_v12 = vmul.f32 %v351_v2, %v348_v4  ;;  %v352_v35 = vmul.f32 %v350_v17, %v349_v21 }
  0xae   : > { %v335_v52 = vsel %vm306_vm4, %v330_v40, %v334_v33 }
  0xaf   : > { %v359_v26 = vmul.f32 %v801_v34, %v353_v12  ;;  %v358_v53 = vmul.f32 %v801_v34, %v352_v35  ;;  %v337_v6 = vadd.f32 %v335_v52, %v309_v31 }
  0xb1   : > { %v362_v42 = vrot.slane %v359_v26, 4 }
  0xb3   : > { %v374_v61 = vpop.permute.xlu1 %373  ;;  %v363_v63 = vsel %vm306_vm4, %v358_v53, %v362_v42 }
  0xb4   : > { %v428_v62 = vpop.permute.xlu0 %427  ;;  %v376_v13 = vsel %vm375_vm3, %v372_v44, %v374_v61  ;;  %v377_v29 = vsel %vm375_vm3, %v374_v61, %v372_v44  ;;  %v496_v8 = vpop.permute.xlu2 %495  ;;  %v365_v11 = vadd.f32 %v363_v63, %v337_v6 }
  0xb5   : > { %v381_v22 = vmul.f32 %v379_v10, %v376_v13  ;;  %v380_v43 = vmul.f32 %v378_v27, %v377_v29  ;;  %v462_v10 = vperm.slane %v823_v54, 6 }
  0xb7   : > { %v387_v37 = vmul.f32 %v805_v41, %v381_v22  ;;  %v386_v0 = vmul.f32 %v805_v41, %v380_v43 }
  0xb9   : > { %v390_v59 = vrot.slane %v387_v37, 4 }
  0xbb   : > { %v402_v18 = vpop.permute.xlu1 %401  ;;  %v391_v41 = vsel %vm306_vm4, %v386_v0, %v390_v59 }
  0xbc   : > { %v458_v19 = vpop.permute.xlu0 %457  ;;  %v405_v23 = vsel %vm403_vm5, %v402_v18, %v817_v49  ;;  %v404_v44 = vsel %vm403_vm5, %v817_v49, %v402_v18  ;;  %v393_v18 = vadd.f32 %v391_v41, %v365_v11 }
  0xbd   : > { %v409_v30 = vmul.f32 %v407_v16, %v405_v23  ;;  %v408_v49 = vmul.f32 %v406_v36, %v404_v44  ;;  %v461_v2 = vsel %vm459_vm6, %v458_v19, %v827_v58  ;;  %v460_v12 = vsel %vm459_vm6, %v827_v58, %v458_v19  ;;  %v539_v53 = vpop.permute.xlu2 %538 }
  0xbe   : > { %v465_v13 = vmul.f32 %v463_v32, %v461_v2  ;;  %v464_v21 = vmul.f32 %v462_v10, %v460_v12 }
  0xbf   : > { %v415_v48 = vmul.f32 %v809_v46, %v409_v30  ;;  %v414_v9 = vmul.f32 %v809_v46, %v408_v49 }
  0xc1   : > { %v418_v47 = vrot.slane %v415_v48, 4 }
  0xc3   : > { %v430_v55 = vpop.permute.xlu1 %429  ;;  %v419_v15 = vsel %vm306_vm4, %v414_v9, %v418_v47 }
  0xc4   : > { %v486_v57 = vpop.permute.xlu0 %485  ;;  %v432_v60 = vsel %vm431_vm7, %v428_v62, %v430_v55  ;;  %v433_v61 = vsel %vm431_vm7, %v430_v55, %v428_v62  ;;  %v421_v54 = vadd.f32 %v419_v15, %v393_v18 }
  0xc5   : > { %v437_v1 = vmul.f32 %v435_v38, %v433_v61  ;;  %v489_v34 = vsel %vm487_vm8, %v486_v57, %v484_v28  ;;  %v436_v3 = vmul.f32 %v434_v50, %v432_v60  ;;  %v488_v62 = vsel %vm487_vm8, %v484_v28, %v486_v57 }
  0xc6   : > { %v493_v4 = vmul.f32 %v491_v51, %v489_v34  ;;  %v492_v5 = vmul.f32 %v490_v56, %v488_v62 }
  0xc7   : > { %v443_v7 = vmul.f32 %v803_v39, %v437_v1  ;;  %v442_v16 = vmul.f32 %v803_v39, %v436_v3 }
  0xc8   : > { %v499_v17 = vmul.f32 %v496_v8, %v493_v4  ;;  %v498_v23 = vmul.f32 %v496_v8, %v492_v5 }
  0xc9   : > { %v446_v14 = vrot.slane %v443_v7, 4 }
  0xca   : > { %v502_v24 = vrot.slane %v499_v17, 4 }
  0xcb   : > { %v468_v20 = vpop.permute.xlu1 %467  ;;  %v447_v46 = vsel %vm306_vm4, %v442_v16, %v446_v14 }
  0xcc   : > { %v471_v22 = vmul.f32 %v468_v20, %v465_v13  ;;  %v470_v25 = vmul.f32 %v468_v20, %v464_v21  ;;  %v449_v58 = vadd.f32 %v447_v46, %v421_v54  ;;  %v503_v27 = vsel %vm306_vm4, %v498_v23, %v502_v24  ;;  %v512_v28 = vpop.permute.xlu0 %511 }
  0xce   : > { %v474_v45 = vrot.slane %v471_v22, 4 }
  0xd0   : > { %v475_v19 = vsel %vm306_vm4, %v470_v25, %v474_v45 }
  0xd1   : > { %v477_v26 = vadd.f32 %v475_v19, %v449_v58 }
  0xd3   : > { %v505_v39 = vadd.f32 %v503_v27, %v477_v26 }
  0xd4   : > { %v525_v30 = vpop.permute.xlu1 %524 }
  0xd5   : > { %v506_v29 = vmax.f32 %v505_v39, 0.0  ;;  %v553_v60 = vpop.permute.xlu0 %552 }
  0xd7   : > { %v515_v31 = vperm.slane %v506_v29, 0  ;;  %v516_v33 = vperm.slane %v506_v29, 4  ;;  %v527_v35 = vperm.slane %v506_v29, 1  ;;  %v528_v36 = vperm.slane %v506_v29, 5 }
  0xd8   : > { %v555_v37 = vperm.slane %v506_v29, 3  ;;  %v556_v38 = vperm.slane %v506_v29, 7  ;;  %v541_v40 = vperm.slane %v506_v29, 2  ;;  %v542_v42 = vperm.slane %v506_v29, 6 }
  0xd9   : > { %v519_v43 = vperm.slane %v515_v31, 0  ;;  %v520_v44 = vperm.slane %v516_v33, 0  ;;  %v531_v48 = vperm.slane %v527_v35, 1  ;;  %v532_v50 = vperm.slane %v528_v36, 1 }
  0xda   : > { %v559_v51 = vperm.slane %v555_v37, 3  ;;  %v560_v52 = vperm.slane %v556_v38, 3  ;;  %v545_v32 = vperm.slane %v541_v40, 2  ;;  %v546_v55 = vperm.slane %v542_v42, 2 }
  0xdb   : > { %v521_v56 = vmul.f32 %v519_v43, %v512_v28  ;;  %v522_v57 = vmul.f32 %v520_v44, %v512_v28  ;;  %v533_v59 = vmul.f32 %v531_v48, %v525_v30  ;;  %v534_v49 = vmul.f32 %v532_v50, %v525_v30 }
  0xdc   : > { %v547_v0 = vmul.f32 %v545_v32, %v539_v53  ;;  %v548_v1 = vmul.f32 %v546_v55, %v539_v53  ;;  %v561_v34 = vmul.f32 %v559_v51, %v553_v60  ;;  %v562_v47 = vmul.f32 %v560_v52, %v553_v60 }
  0xdd   : > { %v535_v61 = vadd.f32 %v533_v59, %v521_v56  ;;  %v536_v63 = vadd.f32 %v534_v49, %v522_v57  ;;  %v568_v4 = vpop.permute.xlu1 %567 }
  0xdf   : > { %v549_v2 = vadd.f32 %v547_v0, %v535_v61  ;;  %v550_v3 = vadd.f32 %v548_v1, %v536_v63 }
  0xe1   : > { %v563_v6 = vadd.f32 %v561_v34, %v549_v2  ;;  %v564_v7 = vadd.f32 %v562_v47, %v550_v3 }
  0xe3   : > { %v570_v62 = vadd.f32 %v568_v4, %v563_v6  ;;  %v571_v8 = vadd.f32 %v568_v4, %v564_v7 }
  0xe5   : > { %572 = vst [vmem:[%s251_s28] sm:$0xff] %v570_v62 }
  0xe6   : > { %573 = vst [vmem:[%s251_s28 + $0x8] sm:$0xff] %v571_v8 }
  0xe7 PF: > { %s16_s21 = sadd.s32 1, %s689_s21  }
  0xe8   : > { %p13_p4 = scmp.ge.s32.totalorder %s16_s21, 4  }
  0xea   :  { %15 = sbr.rel (!%p13_p4) target bundleno = 1 (0x1), region = 74 }

</bundles_post_ra>
